<compile_context>
chip_gen: v7x
topology: tpu7x:2x2x1
jax: 0.10.0
libtpu: 0.0.40
codegen_flags: <defaults>
</compile_context>

<pallas_src>
import functools
import math

import jax
import jax.numpy as jnp
from jax import lax
from jax.experimental import pallas as pl
from jax.experimental.pallas import tpu as pltpu


def _round_up(x, m):
    return ((x + m - 1) // m) * m


_VMEM_LIMIT = 64 * 1024 * 1024


# ----------------------------------------------------------------------------
# 1. Patch embeddings (Conv2d(k=P, stride=P) as a flattened matmul)
# ----------------------------------------------------------------------------
def _patch_proj_kernel(p_ref, w_ref, epi_ref, o_ref):
    # p_ref:   (1, tn, K)  bf16 patch rows for one batch element / tile
    # w_ref:   (K, Hd)     bf16 flattened conv weight (constant block index)
    # epi_ref: (tn, Hd)    f32  pos-embedding (+conv bias), shared across batch
    # o_ref:   (1, tn, Hd) bf16 dense, lane-aligned stores
    acc = jnp.dot(p_ref[0], w_ref[...], preferred_element_type=jnp.float32)
    o_ref[0] = (acc + epi_ref[...]).astype(o_ref.dtype)


def patch_embeddings_forward(x_nchw, conv_w, conv_b, classify_t,
                             position_embeddings, *, row_tile=512):
    """x_nchw: [B, C, H, W]. Returns bf16 [B, Np + 1, hidden] (cls + patches + pos)."""
    B, C, H, W = x_nchw.shape
    Hd, _, P, _ = conv_w.shape
    Hp, Wp = H // P, W // P
    Np = Hp * Wp
    K = C * P * P

    # TODO(synk): fuse the NCHW patchify/transpose/bf16-cast into the
    # pallas_call (index_map on a (B,Hp,Wp,C,P,P) view) to save one HBM round
    # trip of the patch tensor.
    patches = x_nchw.reshape(B, C, Hp, P, Wp, P).transpose(0, 2, 4, 1, 3, 5)
    patches = patches.reshape(B, Np, K).astype(jnp.bfloat16)
    w_flat = conv_w.reshape(Hd, K).T.astype(jnp.bfloat16)             # (K, Hd)

    pos = position_embeddings[0].astype(jnp.float32)                  # (Np+1, Hd)
    # Fold conv bias into the per-patch position embedding: single epilogue
    # stream, shared across the batch (NOT tiled B times).
    epi = pos[1:, :] + conv_b.reshape(1, Hd).astype(jnp.float32)      # (Np, Hd)

    tn = min(row_tile, _round_up(Np, 8))
    Np_pad = _round_up(Np, tn)
    if Np_pad != Np:
        patches = jnp.pad(patches, ((0, 0), (0, Np_pad - Np), (0, 0)))
        epi = jnp.pad(epi, ((0, Np_pad - Np), (0, 0)))

    out = pl.pallas_call(
        _patch_proj_kernel,
        out_shape=jax.ShapeDtypeStruct((B, Np_pad, Hd), jnp.bfloat16),
        grid_spec=pltpu.PrefetchScalarGridSpec(
            num_scalar_prefetch=0,
            grid=(B, Np_pad // tn),
            in_specs=[
                pl.BlockSpec((1, tn, K), lambda b, n: (b, n, 0)),
                # Constant block index -> weight effectively resident.
                pl.BlockSpec((K, Hd), lambda b, n: (0, 0)),
                # Indexed only by the patch-tile coord -> read once per tile,
                # not once per (batch, tile).
                pl.BlockSpec((tn, Hd), lambda b, n: (n, 0)),
            ],
            out_specs=pl.BlockSpec((1, tn, Hd), lambda b, n: (b, n, 0)),
        ),
        compiler_params=pltpu.CompilerParams(
            dimension_semantics=("parallel", "parallel"),
            vmem_limit_bytes=_VMEM_LIMIT),
    )(patches, w_flat, epi)

    out = out[:, :Np, :]
    cls_row = (classify_t.reshape(1, 1, Hd).astype(jnp.float32)
               + pos[0:1, :].reshape(1, 1, Hd))                       # (1, 1, Hd)
    cls_row = jnp.broadcast_to(cls_row, (B, 1, Hd)).astype(jnp.bfloat16)
    # TODO(synk): embedding nn.Dropout omitted (inference-mode identity).
    return jnp.concatenate([cls_row, out], axis=1)


# ----------------------------------------------------------------------------
# 2. Fused transformer block (LN1 -> MHA -> res -> LN2 -> MLP -> res)
# ----------------------------------------------------------------------------
def _block_kernel(x_ref, ln1w_ref, ln1b_ref, wqkv_ref, bqkv_ref, wo_ref, bo_ref,
                  ln2w_ref, ln2b_ref, w1_ref, b1_ref, w2_ref, b2_ref, o_ref,
                  *, num_heads, head_dim, eps):
    x = x_ref[0].astype(jnp.float32)                          # (T, D) f32 math

    def layernorm(v, w, b):
        mu = jnp.mean(v, axis=-1, keepdims=True)
        cen = v - mu
        var = jnp.mean(cen * cen, axis=-1, keepdims=True)
        return cen * lax.rsqrt(var + eps) * w + b

    # --- multi-head self-attention ---
    h = layernorm(x, ln1w_ref[...], ln1b_ref[...])
    # Fused QKV projection: one (T, D) x (D, 3H) bf16 matmul, f32 accumulate.
    qkv = (jnp.dot(h.astype(jnp.bfloat16), wqkv_ref[...],
                   preferred_element_type=jnp.float32) + bqkv_ref[...])
    Hc = num_heads * head_dim
    scale = 1.0 / math.sqrt(head_dim)
    heads = []
    for i in range(num_heads):                                # static unroll
        lo = i * head_dim
        q = qkv[:, lo:lo + head_dim]
        k = qkv[:, Hc + lo:Hc + lo + head_dim]
        v = qkv[:, 2 * Hc + lo:2 * Hc + lo + head_dim]
        # q @ k^T via contracting dim 1 of both (MXU transposed-RHS matmul).
        s = lax.dot_general(q.astype(jnp.bfloat16), k.astype(jnp.bfloat16),
                            (((1,), (1,)), ((), ())),
                            preferred_element_type=jnp.float32) * scale
        s = s - jnp.max(s, axis=-1, keepdims=True)
        p = jnp.exp(s)
        p = p * pl.reciprocal(jnp.sum(p, axis=-1, keepdims=True), approx=True)
        # TODO(synk): attention-prob dropout omitted (inference identity).
        heads.append(jnp.dot(p.astype(jnp.bfloat16), v.astype(jnp.bfloat16),
                             preferred_element_type=jnp.float32))
    # Fused output projection on the concatenated head outputs.
    cat = jnp.concatenate(heads, axis=-1).astype(jnp.bfloat16)  # (T, H)
    attn = jnp.dot(cat, wo_ref[...], preferred_element_type=jnp.float32)
    x = x + attn + bo_ref[...]

    # --- MLP with NewGELU ---
    h = layernorm(x, ln2w_ref[...], ln2b_ref[...])
    m = (jnp.dot(h.astype(jnp.bfloat16), w1_ref[...],
                 preferred_element_type=jnp.float32) + b1_ref[...])
    g = math.sqrt(2.0 / math.pi)
    m = 0.5 * m * (1.0 + jnp.tanh(g * (m + 0.044715 * (m * m * m))))
    m = (jnp.dot(m.astype(jnp.bfloat16), w2_ref[...],
                 preferred_element_type=jnp.float32) + b2_ref[...])
    # TODO(synk): MLP / output dropout omitted (inference identity).
    x = x + m

    o_ref[0] = x.astype(o_ref.dtype)


def transformer_block_forward(x, layer_params, *, num_heads, eps=1e-5):
    B, T, D = x.shape
    dh = layer_params['wq'].shape[2]
    H = num_heads * dh
    f32, bf16 = jnp.float32, jnp.bfloat16

    def to_cols(w):                      # (nh, D, dh) -> (D, nh*dh), head-major cols
        return jnp.transpose(w, (1, 0, 2)).reshape(D, H)

    # Pre-cast / fuse weights: matmul operands stored and streamed as bf16.
    w_qkv = jnp.concatenate([to_cols(layer_params['wq']),
                             to_cols(layer_params['wk']),
                             to_cols(layer_params['wv'])], axis=1).astype(bf16)
    b_qkv = jnp.concatenate([layer_params['bq'].reshape(1, H),
                             layer_params['bk'].reshape(1, H),
                             layer_params['bv'].reshape(1, H)], axis=1).astype(f32)
    w_out = layer_params['wo'].reshape(H, D).astype(bf16)

    weights = [
        layer_params['ln1_w'].astype(f32), layer_params['ln1_b'].astype(f32),
        w_qkv, b_qkv,
        w_out, layer_params['bo'].astype(f32),
        layer_params['ln2_w'].astype(f32), layer_params['ln2_b'].astype(f32),
        layer_params['w1'].astype(bf16), layer_params['b1'].astype(f32),
        layer_params['w2'].astype(bf16), layer_params['b2'].astype(f32),
    ]

    kernel = functools.partial(_block_kernel, num_heads=num_heads,
                               head_dim=dh, eps=eps)

    def const_spec(arr):
        nd = arr.ndim
        # Constant block index -> weights stay resident across grid steps.
        # TODO(synk): single-buffer these (pl.Buffered(1)) for large models.
        return pl.BlockSpec(arr.shape, lambda b, _nd=nd: (0,) * _nd)

    in_specs = [pl.BlockSpec((1, T, D), lambda b: (b, 0, 0))]
    in_specs += [const_spec(w) for w in weights]

    # TODO(synk): add a second parallel grid axis over query-row tiles for
    # large T / B=1 (megacore sharding on v7x); kept grid=(B,) for small T.
    return pl.pallas_call(
        kernel,
        out_shape=jax.ShapeDtypeStruct((B, T, D), jnp.bfloat16),
        grid=(B,),
        in_specs=in_specs,
        out_specs=pl.BlockSpec((1, T, D), lambda b: (b, 0, 0)),
        compiler_params=pltpu.CompilerParams(
            dimension_semantics=("parallel",),
            vmem_limit_bytes=_VMEM_LIMIT),
    )(x.astype(bf16), *weights)


# ----------------------------------------------------------------------------
# 3. Classifier head on the CLS token
# ----------------------------------------------------------------------------
def _classifier_kernel(x_ref, w_ref, b_ref, o_ref):
    o_ref[...] = (jnp.dot(x_ref[...], w_ref[...],
                          preferred_element_type=jnp.float32)
                  + b_ref[...]).astype(o_ref.dtype)


def classifier_forward(x_cls, w, b):
    B, D = x_cls.shape
    NC = w.shape[1]
    NCp = _round_up(NC, 128)   # lane-dense output stores (no masked vst)
    w_p = jnp.pad(w, ((0, 0), (0, NCp - NC))).astype(jnp.bfloat16)
    b_p = jnp.pad(b.reshape(1, NC), ((0, 0), (0, NCp - NC))).astype(jnp.float32)
    out = pl.pallas_call(
        _classifier_kernel,
        out_shape=jax.ShapeDtypeStruct((B, NCp), jnp.float32),
    )(x_cls.astype(jnp.bfloat16), w_p, b_p)
    return out[:, :NC]


# ----------------------------------------------------------------------------
# Full forward
# ----------------------------------------------------------------------------
def vit_forward(x, params, config):
    emb = patch_embeddings_forward(x, params['conv_w'], params['conv_b'],
                                   params['cls'], params['pos'])
    h = emb
    for layer_params in params['layers']:
        h = transformer_block_forward(h, layer_params,
                                      num_heads=config['num_attention_heads'])
    logits = classifier_forward(h[:, 0, :], params['cls_w'], params['cls_b'])
    return logits, emb


# ----------------------------------------------------------------------------
# Pure-JAX reference mirroring the PyTorch forward (eval mode)
# ----------------------------------------------------------------------------
def _vit_reference(x, params, config):
    B, C, H, W = x.shape
    P = config['patch_size']
    D = config['hidden_size']
    nh = config['num_attention_heads']
    dh = D // nh
    eps = 1e-5
    Hp, Wp = H // P, W // P
    Np = Hp * Wp
    K = C * P * P

    patches = x.reshape(B, C, Hp, P, Wp, P).transpose(0, 2, 4, 1, 3, 5)
    patches = patches.reshape(B, Np, K)
    proj = jnp.einsum('bnk,hk->bnh', patches,
                      params['conv_w'].reshape(D, K)) + params['conv_b']
    cls = jnp.broadcast_to(params['cls'], (B, 1, D))
    h = jnp.concatenate([cls, proj], axis=1) + params['pos']
    emb = h

    def ln(v, w, b):
        mu = v.mean(-1, keepdims=True)
        var = ((v - mu) ** 2).mean(-1, keepdims=True)
        return (v - mu) / jnp.sqrt(var + eps) * w + b

    g = math.sqrt(2.0 / math.pi)
    for lyr in params['layers']:
        y = ln(h, lyr['ln1_w'], lyr['ln1_b'])
        heads = []
        for i in range(nh):
            q = y @ lyr['wq'][i] + lyr['bq'][i]
            k = y @ lyr['wk'][i] + lyr['bk'][i]
            v = y @ lyr['wv'][i] + lyr['bv'][i]
            s = jnp.einsum('btd,bsd->bts', q, k) / math.sqrt(dh)
            p = jax.nn.softmax(s, axis=-1)
            heads.append(jnp.einsum('bts,bsd->btd', p, v))
        cat = jnp.concatenate(heads, axis=-1)
        h = h + cat @ lyr['wo'].reshape(nh * dh, D) + lyr['bo']
        y = ln(h, lyr['ln2_w'], lyr['ln2_b'])
        m = y @ lyr['w1'] + lyr['b1']
        m = 0.5 * m * (1.0 + jnp.tanh(g * (m + 0.044715 * m ** 3)))
        h = h + m @ lyr['w2'] + lyr['b2']
    logits = h[:, 0, :] @ params['cls_w'] + params['cls_b']
    return logits, emb


# ----------------------------------------------------------------------------
# Deterministic parameter init
# ----------------------------------------------------------------------------
def _init_params(key, config):
    D = config['hidden_size']
    C = config['num_channels']
    P = config['patch_size']
    nh = config['num_attention_heads']
    dh = D // nh
    I = config['intermediate_size']
    NC = config['num_classes']
    L = config['num_hidden_layers']
    Np = (config['image_size'] // P) ** 2
    std = config['initializer_range']

    keys = iter(jax.random.split(key, 8 + 16 * L))

    def nrm(shape, s=std):
        return s * jax.random.normal(next(keys), shape, jnp.float32)

    params = {
        'conv_w': nrm((D, C, P, P)),
        'conv_b': nrm((D,)),
        'cls': nrm((1, 1, D)),
        'pos': nrm((1, Np + 1, D)),
        'cls_w': nrm((D, NC)),
        'cls_b': nrm((1, NC)),
        'layers': [],
    }
    for _ in range(L):
        params['layers'].append({
            'ln1_w': 1.0 + nrm((1, D), 0.1), 'ln1_b': nrm((1, D)),
            'wq': nrm((nh, D, dh)), 'bq': nrm((nh, 1, dh)),
            'wk': nrm((nh, D, dh)), 'bk': nrm((nh, 1, dh)),
            'wv': nrm((nh, D, dh)), 'bv': nrm((nh, 1, dh)),
            'wo': nrm((nh, dh, D)), 'bo': nrm((1, D)),
            'ln2_w': 1.0 + nrm((1, D), 0.1), 'ln2_b': nrm((1, D)),
            'w1': nrm((D, I)), 'b1': nrm((1, I)),
            'w2': nrm((I, D)), 'b2': nrm((1, D)),
        })
    return params


if __name__ == "__main__":
    config = dict(
        image_size=16, patch_size=4, num_channels=4, hidden_size=32,
        num_attention_heads=4, intermediate_size=128, num_hidden_layers=2,
        num_classes=10, qkv_bias=True, hidden_dropout_prob=0.0,
        attention_probs_dropout_prob=0.0, initializer_range=0.02)

    root = jax.random.PRNGKey(0)
    k_params, k_x = jax.random.split(root)
    params = _init_params(k_params, config)
    x = jax.random.normal(
        k_x, (2, config['num_channels'], config['image_size'],
              config['image_size']), dtype=jnp.float32)

    logits, emb = vit_forward(x, params, config)
    logits = jax.block_until_ready(logits)

    ref_logits, ref_emb = _vit_reference(x, params, config)
    Np = (config['image_size'] // config['patch_size']) ** 2
    assert logits.shape == (2, config['num_classes']), logits.shape
    assert emb.shape == (2, Np + 1, config['hidden_size']), emb.shape
    emb_f32 = emb.astype(jnp.float32)
    assert jnp.allclose(emb_f32, ref_emb, atol=1e-2, rtol=1e-2), \
        float(jnp.max(jnp.abs(emb_f32 - ref_emb)))
    assert jnp.allclose(logits, ref_logits, atol=1e-2, rtol=1e-2), \
        float(jnp.max(jnp.abs(logits - ref_logits)))
    print("KERNEL_OK")
</pallas_src>

<mosaic_0001>
module attributes {stable_mosaic.version = 11 : i64} {
  func.func @_patch_proj_kernel(%arg0: i32, %arg1: i32, %arg2: memref<1x16x64xbf16, #tpu.memory_space<vmem>>, %arg3: memref<64x32xbf16, #tpu.memory_space<vmem>>, %arg4: memref<16x32xf32, #tpu.memory_space<vmem>>, %arg5: memref<1x16x32xbf16, #tpu.memory_space<vmem>>) attributes {dimension_semantics = [#tpu.dimension_semantics<parallel>, #tpu.dimension_semantics<parallel>], iteration_bounds = array<i64: 2, 1>, scalar_prefetch = 0 : i64, scratch_operands = 0 : i64, tpu.core_type = #tpu.core_type<tc>, window_params = [{transform_indices = @transform_0, window_bounds = array<i64: 1, 16, 64>}, {pipeline_mode = #tpu.pipeline_mode<synchronous>, transform_indices = @transform_1, window_bounds = array<i64: 64, 32>}, {transform_indices = @transform_2, window_bounds = array<i64: 16, 32>}, {transform_indices = @transform_3, window_bounds = array<i64: 1, 16, 32>}]} {
    %c0 = arith.constant 0 : index
    %c0_0 = arith.constant 0 : index
    %c0_1 = arith.constant 0 : index
    %0 = vector.load %arg2[%c0, %c0_0, %c0_1] : memref<1x16x64xbf16, #tpu.memory_space<vmem>>, vector<1x16x64xbf16>
    %1 = vector.shape_cast %0 : vector<1x16x64xbf16> to vector<16x64xbf16>
    %c0_2 = arith.constant 0 : index
    %c0_3 = arith.constant 0 : index
    %2 = vector.load %arg3[%c0_2, %c0_3] : memref<64x32xbf16, #tpu.memory_space<vmem>>, vector<64x32xbf16>
    %cst = arith.constant dense<0.000000e+00> : vector<16x32xf32>
    %3 = tpu.matmul %1, %2, %cst {dimension_numbers = #tpu.dot_dimension_numbers<[1], [0], [0], [1], [0, 0, 1, 1], [], []>} : vector<16x64xbf16>, vector<64x32xbf16>, vector<16x32xf32> -> vector<16x32xf32>
    %c0_4 = arith.constant 0 : index
    %c0_5 = arith.constant 0 : index
    %4 = vector.load %arg4[%c0_4, %c0_5] : memref<16x32xf32, #tpu.memory_space<vmem>>, vector<16x32xf32>
    %5 = arith.addf %3, %4 : vector<16x32xf32>
    %6 = arith.truncf %5 : vector<16x32xf32> to vector<16x32xbf16>
    %c0_6 = arith.constant 0 : index
    %c0_7 = arith.constant 0 : index
    %c0_8 = arith.constant 0 : index
    %7 = vector.load %arg5[%c0_6, %c0_7, %c0_8] : memref<1x16x32xbf16, #tpu.memory_space<vmem>>, vector<1x16x32xbf16>
    %8 = vector.shape_cast %7 : vector<1x16x32xbf16> to vector<16x32xbf16>
    %9 = vector.shape_cast %6 : vector<16x32xbf16> to vector<1x16x32xbf16>
    tpu.vector_store %arg5[%c0_6, %c0_7, %c0_8], %9 {strides = array<i32>} : memref<1x16x32xbf16, #tpu.memory_space<vmem>>, vector<1x16x32xbf16>,
    return
  }
  func.func @transform_0(%arg0: i32, %arg1: i32) -> (i32, i32, i32) {
    %c0_i32 = arith.constant 0 : i32
    %c0_i32_0 = arith.constant 0 : i32
    return %arg0, %arg1, %c0_i32 : i32, i32, i32
  }
  func.func @transform_1(%arg0: i32, %arg1: i32) -> (i32, i32) {
    %c0_i32 = arith.constant 0 : i32
    %c0_i32_0 = arith.constant 0 : i32
    %c0_i32_1 = arith.constant 0 : i32
    return %c0_i32, %c0_i32_0 : i32, i32
  }
  func.func @transform_2(%arg0: i32, %arg1: i32) -> (i32, i32) {
    %c0_i32 = arith.constant 0 : i32
    %c0_i32_0 = arith.constant 0 : i32
    return %arg1, %c0_i32 : i32, i32
  }
  func.func @transform_3(%arg0: i32, %arg1: i32) -> (i32, i32, i32) {
    %c0_i32 = arith.constant 0 : i32
    %c0_i32_0 = arith.constant 0 : i32
    return %arg0, %arg1, %c0_i32 : i32, i32, i32
  }
}

</mosaic_0001>

<bundles_post_ra>
// kernel: tpu_custom_call.1
= control target key start
LH: loop header
LB: loop body
LE: loop exit
PB: predicated region body
PF: predicated region fallthrough
CT: control target
= control target key end

     0   :  { %8 = vsyncpa [#allocation3], 0  ;;  %s1080_s0 = inlined_call_operand.hbm [shape: bf16[2,16,64], index: 0, kind: input, shape index: {}]   ;;  %s1081_s1 = inlined_call_operand.hbm [shape: bf16[64,32], index: 1, kind: input, shape index: {}]   ;;  %s1082_s2 = inlined_call_operand.hbm [shape: f32[16,32], index: 2, kind: input, shape index: {}]   ;;  %s1083_s3 = inlined_call_operand.hbm [shape: bf16[2,16,32], index: 3, kind: output, shape index: {}]  }
   0x1   :  { %10 = vsyncpa [#allocation3 + $0x1], 0 }
   0x2   :  { %11 = vsyncpa [#allocation6], 0 }
   0x3   :  { %12 = vsyncpa [#allocation4], 0 }
   0x4   :  { %14 = vsyncpa [#allocation4 + $0x1], 0  ;;  %s819_s12 = smov 0   ;;  %s821_s13 = smov 0  }
   0x5   :  { %s823_s14 = smov 0   ;;  %s825_s15 = smov 0  }
   0x6   :  { %s827_s16 = smov 0   ;;  %s829_s17 = smov 0  }
   0x7 LB: > { %s469_s18 = sadd.s32 4294967295, %s785_s17   ;;  %s470_s19 = sadd.s32 4294967294, %s785_s17   ;;  %s785_s17 = sphi %s829_s17, %s20_s17   ;;  %s781_s16 = sphi %s827_s16, %s1105_s16   ;;  %s777_s15 = sphi %s825_s15, %s1104_s15   ;;  %s773_s14 = sphi %s823_s14, %s1103_s14   ;;  %s769_s13 = sphi %s821_s13, %s1102_s13   ;;  %s765_s12 = sphi %s819_s12, %s1101_s12  }
   0x8   : > { %p54_p0 = scmp.ne.s32.totalorder %s769_s13, %s765_s12  ;;  %p853_p1 = scmp.eq.s32.totalorder %s469_s18, 0 }
   0x9   : > { %p857_p2 = scmp.eq.s32.totalorder %s469_s18, 1  ;;  %p133_p3 = scmp.eq.s32.totalorder %s470_s19, 1 }
   0xa   : > { %s1088_s20 = scalar_select %p853_p1, 1, 0 }
   0xb   : > { %p863_p4 = por %p853_p1, %p54_p0  ;;  %p471_p5 = scmp.ge.s32.totalorder %s785_s17, 1 }
   0xc   : > { %p868_p6 = por %p133_p3, %p54_p0  ;;  %p140_p7 = scmp.lt.s32.totalorder %s785_s17, 3 }
   0xd   : > { %s1090_s22 = scalar_select %p863_p4, 1, 0 }
   0xe   : > { %s1091_s23 = scalar_select %p868_p6, 1, 0 }
   0xf   : > { %p873_p8 = pnand %p471_p5, %p140_p7  ;;  %s787_s25 = smov [#allocation5]  }
  0x10   : > { %s152_s26 = sshll.u32 %s787_s25, 4  ;;  %s788_s28 = smov [#allocation7]   ;;  %s877_s26 = int_to_ptr.vmem [resolvable:$true] %s152_s26 }
  0x11   : > { %p529_p9 = pneg %p873_p8  ;;  %s168_s29 = sshll.u32 %s788_s28, 4  ;;  %s888_s29 = int_to_ptr.vmem [resolvable:$true] %s168_s29 }
  0x12   : > { %s613_s5 = scalar_lea.hbm %s1081_s1, 512 }
  0x13   : > { %p884_p11 = pnand %p529_p9, %p853_p1  ;;  %p614_p12 = scmp.ne.s32.totalorder %s1081_s1, %s613_s5 }
  0x14   : > { %p620_p5 = scmp.lt.u32.totalorder %s613_s5, %s1081_s1 }
  0x15   : > { %p615_p13 = pneg %p884_p11 }
  0x17   : > { %p616_p0 = pnand %p615_p13, %p614_p12 }
  0x19   : > { %p617_p3 = pneg %p616_p0 }
  0x1b   : > { %p622_p7 = pnand %p620_p5, %p617_p3 }
  0x1d   : > { %625 = shalt.err (!%p622_p7)
}
  0x1e   : > { %s626_s10 = scalar_lea.vmem %s877_s26, 512  ;;  %p634_p1 = scmp.lt.s32.totalorder %s877_s26, %s877_s26 }
  0x1f   : > { %p627_p9 = scmp.ne.s32.totalorder %s877_s26, %s626_s10  ;;  %p635_p12 = scmp.lt.s32.totalorder %s626_s10, %s626_s10 }
  0x21   : > { %p629_p10 = pnand %p627_p9, %p615_p13  ;;  %p636_p0 = por %p635_p12, %p634_p1 }
  0x23   : > { %p630_p6 = pneg %p629_p10 }
  0x25   : > { %p637_p4 = pnand %p636_p0, %p630_p6 }
  0x27   : > { %640 = shalt.err (!%p637_p4)
}
  0x28   : > { %s789_s11 = smov 64   ;;  %s790_s18 = smov 4  }
  0x29   : > { %532 = dma.hbm_to_vmem [thread:$0]  (!%p884_p11), %s1081_s1, 512, %s877_s26, [#allocation6], %s789_s11, %s789_s11, %s790_s18  }
  0x2a   : > { %s641_s4 = scalar_lea.hbm %s1082_s2, 256 }
  0x2b   : > { %p642_p1 = scmp.ne.s32.totalorder %s1082_s2, %s641_s4  ;;  %p648_p10 = scmp.lt.u32.totalorder %s641_s4, %s1082_s2 }
  0x2d   : > { %p644_p4 = pnand %p642_p1, %p615_p13 }
  0x2f   : > { %p645_p6 = pneg %p644_p4 }
  0x31   : > { %p650_p3 = pnand %p648_p10, %p645_p6 }
  0x33   : > { %653 = shalt.err (!%p650_p3)
}
  0x34   : > { %s654_s26 = scalar_lea.vmem %s888_s29, 256  ;;  %p662_p12 = scmp.lt.s32.totalorder %s888_s29, %s888_s29 }
  0x35   : > { %p655_p5 = scmp.ne.s32.totalorder %s888_s29, %s654_s26  ;;  %p663_p0 = scmp.lt.s32.totalorder %s654_s26, %s654_s26 }
  0x37   : > { %p657_p7 = pnand %p655_p5, %p615_p13  ;;  %p664_p1 = por %p663_p0, %p662_p12 }
  0x39   : > { %p658_p9 = pneg %p657_p7 }
  0x3b   : > { %p665_p4 = pnand %p664_p1, %p658_p9 }
  0x3d   : > { %668 = shalt.err (!%p665_p4)
}
  0x3e   : > { %s791_s9 = smov 128   ;;  %s792_s10 = smov 8  }
  0x3f   : > { %535 = dma.hbm_to_vmem [thread:$0]  (!%p884_p11), %s1082_s2, 256, %s888_s29, [#allocation6], %s791_s9, %s791_s9, %s792_s10  }
  0x40   : > { %s32_s28 = sadd.s32 1, %s781_s16  ;;  %s41_s30 = sadd.s32 1, %s773_s14 }
  0x41   : > { %p34_p13 = scmp.ge.s32.totalorder %s32_s28, 2  ;;  %p48_p6 = scmp.ne.s32.totalorder %s773_s14, %s769_s13 }
  0x42   : > { %p49_p10 = scmp.eq.s32.totalorder %s785_s17, 0  ;;  %p546_p3 = scmp.lt.s32.totalorder %s785_s17, 2 }
  0x43   : > { %s1107_s28 = smov (%p34_p13, %s32_s28), 0  ;;  %p955_p7 = por %p857_p2, %p48_p6 }
  0x44   : > { %p50_p5 = por %p49_p10, %p48_p6  ;;  %s36_s27 = ssub.s32 %s781_s16, %s1107_s28 }
  0x45   : > { %s1094_s4 = scalar_select %p955_p7, 1, 0 }
  0x46   : > { %s182_s5 = sand.u32 1, %s773_s14   ;;  %p39_p9 = scmp.eq.s32.totalorder %s36_s27, 0 }
  0x47   : > { %s475_s29 = sshll.u32 %s182_s5, 3  ;;  %s496_s6 = sshll.u32 %s781_s16, 7 }
  0x48   : > { %s964_s7 = scalar_select %p39_p9, %s773_s14, %s41_s30  }
  0x49   : > { %s969_s9 = scalar_lea.hbm %s1080_s0, %s496_s6  ;;  %s186_s21 = scalar_lea.vmem [#allocation2], %s475_s29 }
  0x4a   : > { %s195_s10 = sshll.u32 %s186_s21, 4  ;;  %p973_p2 = pnand %p546_p3, %p50_p5  ;;  %s977_s10 = int_to_ptr.vmem [resolvable:$true] %s195_s10 }
  0x4b   : > { %s979_s25 = scalar_lea.sflag [#allocation3], %s182_s5  ;;  %s669_s30 = scalar_lea.hbm %s969_s9, 128 }
  0x4c   : > { %p670_p11 = scmp.ne.s32.totalorder %s969_s9, %s669_s30  ;;  %p671_p12 = pneg %p973_p2 }
  0x4d   : > { %s674_s6 = scalar_lea.hbm %s1080_s0, 256  ;;  %p675_p4 = scmp.lt.u32.totalorder %s969_s9, %s1080_s0 }
  0x4e   : > { %p672_p0 = pnand %p671_p12, %p670_p11  ;;  %p676_p13 = scmp.lt.u32.totalorder %s674_s6, %s669_s30 }
  0x4f   : > { %p678_p10 = scmp.lt.u32.totalorder %s669_s30, %s969_s9 }
  0x50   : > { %p673_p1 = pneg %p672_p0  ;;  %p677_p6 = por %p676_p13, %p675_p4 }
  0x52   : > { %p679_p3 = por %p678_p10, %p677_p6 }
  0x54   : > { %p680_p5 = pnand %p679_p3, %p673_p1 }
  0x56   : > { %683 = shalt.err (!%p680_p5)
}
  0x57   : > { %s684_s5 = scalar_lea.vmem %s977_s10, 128  ;;  %s793_s21 = smov [#allocation2]  }
  0x58   : > { %p685_p9 = scmp.ne.s32.totalorder %s977_s10, %s684_s5  ;;  %s689_s27 = sshll.u32 %s793_s21, 4  ;;  %s690_s27 = int_to_ptr.vmem [resolvable:$false] %s689_s27 }
  0x59   : > { %s691_s29 = scalar_lea.vmem %s690_s27, 256  ;;  %p692_p7 = scmp.lt.s32.totalorder %s977_s10, %s690_s27 }
  0x5a   : > { %p687_p11 = pnand %p685_p9, %p671_p12  ;;  %p693_p4 = scmp.lt.s32.totalorder %s691_s29, %s684_s5 }
  0x5c   : > { %p688_p0 = pneg %p687_p11  ;;  %p694_p13 = por %p693_p4, %p692_p7 }
  0x5e   : > { %p695_p6 = pnand %p694_p13, %p688_p0 }
  0x60   : > { %698 = shalt.err (!%p695_p6)
}
  0x61   : > { %539 = dma.hbm_to_vmem [thread:$0]  (!%p973_p2), %s969_s9, 128, %s977_s10, %s979_s25, %s789_s11, %s789_s11, %s790_s18  }
  0x62   : > { %207 = sbr.rel (%p873_p8) target bundleno = 359 (0x167), region = 32  ;;  %s1013_s30 = sand.u32 (!%p873_p8), 1, %s769_s13  }
  0x63   : > { %s479_s6 = sshll.u32 (!%p873_p8), %s1013_s30, 3  ;;  %s210_s8 = scalar_lea.sflag (!%p873_p8), [#allocation3], %s1013_s30 }
  0x64   : > { %s213_s26 = scalar_lea.vmem (!%p873_p8), [#allocation2], %s479_s6  ;;  %p1096_p7 = scmp.ne.s32.totalorder (!%p873_p8), %s1090_s22, 0 }
  0x69   : > { %752 = dma.done.wait (%p1096_p7), %s210_s8, 128  }
  0x6a   : > { %754 = vsyncadd (%p1096_p7), %s210_s8, 4294967168  ;;  %p1097_p12 = scmp.ne.s32.totalorder %s1088_s20, 0 }
  0x6c   : > { %756 = dma.done.wait (%p1097_p12), [#allocation6], 768  }
  0x6d   : > { %758 = vsyncadd (%p1097_p12), [#allocation6], 4294966528  ;;  %v794_v0 = vmov 0.0   ;;  %vm795_vm0 = vmmov 0   ;;  %v608_v1 = vld [vmem:[#allocation5] sm:$0xff]   ;;  %v609_v2 = vld [vmem:[#allocation5 + $0x8] sm:$0xff]  }
  0x6e   : > { %505 = vmatprep.subr.bf16.mxu0 %v794_v0  ;;  %513 = vmatprep.mubr.msk.bf16.mxu0 %vm795_vm0, %v794_v0  ;;  %v610_v3 = vld [vmem:[#allocation5 + $0x10] sm:$0xff]   ;;  %v611_v4 = vld [vmem:[#allocation5 + $0x18] sm:$0xff]   ;;  %vm289_vm1 = vcmask 523264   ;;  %v258_v6 = vld [vmem:[#allocation7] sm:$0xff]  ;;  %s243_s20 = scalar_lea.vmem [#allocation8], %s479_s6  ;;  %s499_s24 = sshll.u32 %s777_s15, 7 }
  0x6f   : > { %506 = vmatpush3.bf16.msra.mxu0 %v608_v1  ;;  %v612_v5 = vld [vmem:[%s213_s26] sm:$0xff]   ;;  %v259_v8 = vld [vmem:[#allocation7 + $0x8] sm:$0xff]  ;;  %s361_s22 = sshll.u32 %s243_s20, 4  ;;  %vm342_vm2 = vcmask 257024   ;;  %s1029_s9 = scalar_lea.hbm %s1083_s3, %s499_s24  ;;  %s1031_s22 = int_to_ptr.vmem [resolvable:$true] %s361_s22 }
  0x70   : > { %507 = vmatprep.subr.bf16.mxu0 %v794_v0  ;;  %s346_s10 = scalar_lea.sflag [#allocation4], %s1013_s30  ;;  %s699_s15 = scalar_lea.vmem %s1031_s22, 128 }
  0x71   : > { %p700_p8 = scmp.ne.s32.totalorder %s1031_s22, %s699_s15  ;;  %p1098_p2 = scmp.ne.s32.totalorder %s1094_s4, 0 }
  0x72   : > { %s796_s19 = smov [#allocation8]  }
  0x73   : > { %508 = vmatpush3.bf16.msra.mxu0 %v609_v2  ;;  %p701_p1 = pnand %p700_p8, %p1098_p2  ;;  %s703_s25 = sshll.u32 %s796_s19, 4  ;;  %s704_s25 = int_to_ptr.vmem [resolvable:$false] %s703_s25 }
  0x74   : > { %509 = vmatprep.subr.bf16.mxu0 %v794_v0  ;;  %s705_s5 = scalar_lea.vmem %s704_s25, 256  ;;  %p706_p3 = scmp.lt.s32.totalorder %s1031_s22, %s704_s25 }
  0x75   : > { %p702_p10 = pneg %p701_p1  ;;  %p707_p5 = scmp.lt.s32.totalorder %s705_s5, %s699_s15 }
  0x77   : > { %510 = vmatpush3.bf16.msra.mxu0 %v610_v3  ;;  %p708_p9 = por %p707_p5, %p706_p3 }
  0x78   : > { %511 = vmatprep.subr.bf16.mxu0 %v794_v0 }
  0x79   : > { %p709_p11 = pnand %p708_p9, %p702_p10 }
  0x7b   : > { %512 = vmatpush3.bf16.msra.mxu0 %v611_v4 }
  0x7e   : > { %514 = vmatmul.mubr.msk.bf16.vlgmr.msra.gmra.mrb[0].mxu0 %vm289_vm1, %v612_v5 }
 0x151   : > { %v327_v7 = vpop.f32.mrb[0].mxu0 }
 0x152   : > { %v328_v9 = vadd.f32 %v327_v7, %v258_v6  ;;  %v515_v10 = vpop.f32.mrb[1].mxu0 }
 0x153   : > { %v330_v11 = vpop.f32.mrb[2].mxu0 }
 0x154   : > { %v497_v12 = vpack.c.bf16 %v328_v9, %v328_v9  ;;  %v331_v13 = vadd.f32 %v330_v11, %v259_v8  ;;  %v516_v14 = vpop.f32.mrb[3].mxu0 }
 0x156   : > { %343 = vst.msk [vmem:[%s243_s20] sm:$0xf] %vm342_vm2, %v497_v12  ;;  %v498_v15 = vpack.c.bf16 %v331_v13, %v331_v13 }
 0x158   : > { %344 = vst.msk [vmem:[%s243_s20 + $0x4] sm:$0xf] %vm342_vm2, %v498_v15 }
 0x159   : > { %712 = shalt.err (!%p709_p11)
}
 0x15a   : > { %s713_s21 = scalar_lea.hbm %s1029_s9, 128  ;;  %s717_s6 = scalar_lea.hbm %s1083_s3, 256 }
 0x15b   : > { %p714_p0 = scmp.ne.s32.totalorder %s1029_s9, %s713_s21  ;;  %p718_p6 = scmp.lt.u32.totalorder %s1029_s9, %s1083_s3 }
 0x15c   : > { %p719_p7 = scmp.lt.u32.totalorder %s717_s6, %s713_s21  ;;  %p721_p8 = scmp.lt.u32.totalorder %s713_s21, %s1029_s9 }
 0x15d   : > { %p715_p4 = pnand %p714_p0, %p1098_p2 }
 0x15e   : > { %p720_p12 = por %p719_p7, %p718_p6 }
 0x15f   : > { %p716_p13 = pneg %p715_p4 }
 0x160   : > { %p722_p1 = por %p721_p8, %p720_p12 }
 0x162   : > { %p723_p10 = pnand %p722_p1, %p716_p13 }
 0x164   : > { %726 = shalt.err (!%p723_p10)
}
 0x165   : > { %s797_s20 = smov 64   ;;  %s798_s24 = smov 4  }
 0x166   : > { %527 = dma.vmem_to_hbm [thread:$0]  (%p1098_p2), %s1031_s22, 128, %s1029_s9, %s346_s10, %s797_s20, %s797_s20, %s798_s24  }
 0x167 PF: > { %s376_s11 = sand.u32 1, %s765_s12   ;;  %p1099_p3 = scmp.ne.s32.totalorder %s1091_s23, 0 }
 0x168   : > { %p1100_p5 = scmp.ge.s32.totalorder %s785_s17, 2  ;;  %s377_s18 = scalar_lea.sflag [#allocation4], %s376_s11 }
 0x16a   : > { %p541_p9 = pnand %p1100_p5, %p1099_p3 }
 0x16c   : > { %760 = dma.done.wait (!%p541_p9), %s377_s18, 128  }
 0x16d   : > { %762 = vsyncadd (!%p541_p9), %s377_s18, 4294967168  ;;  %s20_s17 = sadd.s32 1, %s785_s17   ;;  %s1101_s12 = smov %s769_s13 }
 0x16e   : > { %p17_p11 = scmp.ge.s32.totalorder %s20_s17, 4   ;;  %s1102_s13 = smov %s773_s14 }
 0x16f   : > { %s1103_s14 = smov %s964_s7  ;;  %s1104_s15 = smov %s781_s16 }
 0x170   : > { %s1105_s16 = smov %s1107_s28  ;;  %19 = sbr.rel (!%p17_p11) target bundleno = 7 (0x7), region = 86 }
 0x177   :  { %382 = vsyncpa [#allocation3], 1 }
 0x178   :  { %384 = vsyncpa [#allocation3 + $0x1], 1 }
 0x179   :  { %385 = vsyncpa [#allocation6], 1 }
 0x17a   :  { %386 = vsyncpa [#allocation4], 1 }
 0x17b   :  { %388 = vsyncpa [#allocation4 + $0x1], 1 }

</bundles_post_ra>
